<compile_context>
chip_gen: v7x
topology: tpu7x:2x2x1
jax: 0.10.0
libtpu: 0.0.40
codegen_flags: <defaults>
</compile_context>

<pallas_src>
import functools

import jax
import jax.numpy as jnp
from jax.experimental import pallas as pl
from jax.experimental.pallas import tpu as pltpu


_CHUNKS = 8              # batch chunks stacked on the sublane axis
_LANES = 128             # TPU lane width
_DEFAULT_BM = 32 * 1024  # lanes (columns) per grid step; 8*bm batch elems/step


def _cdiv(a, b):
    return (a + b - 1) // b


def _round_up(a, b):
    return _cdiv(a, b) * b


def _pick_tiling(n, bm_max):
    """Choose (bm, m_pad, steps) for a batch of n elements."""
    m = _cdiv(max(n, 1), _CHUNKS)          # columns of the packed layout
    m128 = _round_up(m, _LANES)
    if m128 <= _LANES:
        steps = 1                          # tiny batch: a single step is all there is
    else:
        # >= 2 steps so ("parallel",) spans both v7x TensorCores; more steps
        # once a single step would exceed the VMEM-friendly tile cap.
        steps = max(2, _cdiv(m128, bm_max))
    bm = _round_up(_cdiv(m128, steps), _LANES)
    m_pad = bm * steps
    return bm, m_pad, steps


def _mlp_kernel(x_ref, w1b_ref, w5b_ref, out_ref):
    # x_ref  : (16, bm)  packed input tile (row 2s+k = feature k of chunk s)
    # w1b_ref: (64, 16)  kron(I8, W1), resident in VMEM across all steps
    # w5b_ref: (8, 64)   kron(I8, W5), resident in VMEM across all steps
    # out_ref: (8, bm)   dense output tile (row s = batch chunk s)
    hidden = jnp.maximum(
        jnp.dot(w1b_ref[...], x_ref[...], preferred_element_type=jnp.float32),
        0.0,
    )
    out_ref[...] = jnp.dot(
        w5b_ref[...], hidden, preferred_element_type=jnp.float32
    ).astype(out_ref.dtype)


@functools.partial(jax.jit, static_argnames=("bm_max",))
def mlp_forward(x, w1, w2, w3, w4, w5, *, bm_max=_DEFAULT_BM):
    """Forward pass of Model. x: (N, 2); weights in PyTorch (out, in) layout."""
    del w2, w3, w4                        # dead parameters in the reference forward
    n = x.shape[0]
    bm, m_pad, steps = _pick_tiling(n, bm_max)
    assert bm % _LANES == 0 and m_pad % bm == 0
    n_pad = _CHUNKS * m_pad

    # --- pack the input: pad + transpose + reshape fuse into ONE copy under jit
    xf = x.astype(jnp.float32)
    if n_pad != n:
        xf = jnp.pad(xf, ((0, n_pad - n), (0, 0)))      # zero rows -> relu(0)=0
    # chunk s = batch elements [s*m_pad, (s+1)*m_pad); row 2s+k = feature k
    x_packed = (
        xf.reshape(_CHUNKS, m_pad, 2)
        .transpose(0, 2, 1)
        .reshape(2 * _CHUNKS, m_pad)
    )

    # --- block-diagonal weight expansion (tiny, once per call)
    eye = jnp.eye(_CHUNKS, dtype=jnp.float32)
    w1_big = jnp.kron(eye, w1.astype(jnp.float32))       # (64, 16)
    w5_big = jnp.kron(eye, w5.astype(jnp.float32))       # (8, 64)

    out_packed = pl.pallas_call(
        _mlp_kernel,
        out_shape=jax.ShapeDtypeStruct((_CHUNKS, m_pad), jnp.float32),
        grid_spec=pltpu.PrefetchScalarGridSpec(
            num_scalar_prefetch=0,
            grid=(steps,),
            in_specs=[
                pl.BlockSpec((2 * _CHUNKS, bm), lambda i: (0, i)),   # x tile
                pl.BlockSpec((64, 16), lambda i: (0, 0)),            # W1_big
                pl.BlockSpec((8, 64), lambda i: (0, 0)),             # W5_big
            ],
            out_specs=pl.BlockSpec((_CHUNKS, bm), lambda i: (0, i)),  # dense out
        ),
        compiler_params=pltpu.CompilerParams(
            dimension_semantics=("parallel",),           # batch steps independent
            vmem_limit_bytes=40 * 1024 * 1024,           # covers bm=32K tiles, < v7x 64 MiB
        ),
        cost_estimate=pl.CostEstimate(
            flops=2 * (64 * 16 + 8 * 64) * m_pad,
            transcendentals=0,
            bytes_accessed=(16 * 4 + 8 * 4) * m_pad + (64 * 16 + 8 * 64) * 4,
        ),
    )(x_packed, w1_big, w5_big)

    # (8, m_pad) flattened row-major is exactly batch order -> free reshape.
    y = out_packed.reshape(n_pad)
    return y[:n] if n_pad != n else y


if __name__ == "__main__":
    key = jax.random.PRNGKey(0)
    kx, k1, k2, k3, k4, k5 = jax.random.split(key, 6)

    # Small batch; N=1000 is not a multiple of the packing granularity, so the
    # zero-padding / tail-slicing path is exercised.
    N = 1000
    x = jax.random.normal(kx, (N, 2), dtype=jnp.float32)

    # deterministic parameters, PyTorch Linear weight layout (out, in)
    w1 = jax.random.normal(k1, (8, 2), dtype=jnp.float32) * 0.5
    w2 = jax.random.normal(k2, (16, 8), dtype=jnp.float32) * 0.3
    w3 = jax.random.normal(k3, (16, 16), dtype=jnp.float32) * 0.3
    w4 = jax.random.normal(k4, (8, 16), dtype=jnp.float32) * 0.3
    w5 = jax.random.normal(k5, (1, 8), dtype=jnp.float32) * 0.5

    # pure-JAX reference of the exact PyTorch forward semantics
    # (all Linears are bias=False; hidden_layer1..3 are dead code)
    def ref_forward(xv):
        x1 = jnp.maximum(xv @ w1.T, 0.0)
        return jnp.squeeze(x1 @ w5.T, axis=-1)

    out = jax.block_until_ready(mlp_forward(x, w1, w2, w3, w4, w5))
    ref = ref_forward(x)
    assert out.shape == (N,)
    assert jnp.allclose(out, ref, atol=2e-5, rtol=2e-5)

    # Second case: force a small tile cap so the grid runs 2 parallel steps
    # (exercises the multi-step / megacore path) plus tail padding.
    N2 = 2000
    x2 = jax.random.normal(jax.random.PRNGKey(1), (N2, 2), dtype=jnp.float32)
    out2 = jax.block_until_ready(
        mlp_forward(x2, w1, w2, w3, w4, w5, bm_max=128)
    )
    ref2 = ref_forward(x2)
    assert out2.shape == (N2,)
    assert jnp.allclose(out2, ref2, atol=2e-5, rtol=2e-5)

    print("KERNEL_OK")
</pallas_src>

<mosaic_0001>
module attributes {stable_mosaic.version = 11 : i64} {
  func.func @_mlp_kernel(%arg0: i32, %arg1: memref<16x128xf32, #tpu.memory_space<vmem>>, %arg2: memref<64x16xf32, #tpu.memory_space<vmem>>, %arg3: memref<8x64xf32, #tpu.memory_space<vmem>>, %arg4: memref<8x128xf32, #tpu.memory_space<vmem>>) attributes {dimension_semantics = [#tpu.dimension_semantics<parallel>], iteration_bounds = array<i64: 1>, scalar_prefetch = 0 : i64, scratch_operands = 0 : i64, tpu.core_type = #tpu.core_type<tc>, window_params = [{transform_indices = @transform_0, window_bounds = array<i64: 16, 128>}, {pipeline_mode = #tpu.pipeline_mode<synchronous>, transform_indices = @transform_1, window_bounds = array<i64: 64, 16>}, {pipeline_mode = #tpu.pipeline_mode<synchronous>, transform_indices = @transform_2, window_bounds = array<i64: 8, 64>}, {transform_indices = @transform_3, window_bounds = array<i64: 8, 128>}]} {
    %c0 = arith.constant 0 : index
    %c0_0 = arith.constant 0 : index
    %0 = vector.load %arg2[%c0, %c0_0] : memref<64x16xf32, #tpu.memory_space<vmem>>, vector<64x16xf32>
    %c0_1 = arith.constant 0 : index
    %c0_2 = arith.constant 0 : index
    %1 = vector.load %arg1[%c0_1, %c0_2] : memref<16x128xf32, #tpu.memory_space<vmem>>, vector<16x128xf32>
    %cst = arith.constant dense<0.000000e+00> : vector<64x128xf32>
    %2 = tpu.matmul %0, %1, %cst {dimension_numbers = #tpu.dot_dimension_numbers<[1], [0], [0], [1], [0, 0, 1, 1], [], []>} : vector<64x16xf32>, vector<16x128xf32>, vector<64x128xf32> -> vector<64x128xf32>
    %cst_3 = arith.constant 0.000000e+00 : f32
    %3 = vector.broadcast %cst_3 : f32 to vector<64x128xf32>
    %4 = arith.maximumf %2, %3 : vector<64x128xf32>
    %c0_4 = arith.constant 0 : index
    %c0_5 = arith.constant 0 : index
    %5 = vector.load %arg3[%c0_4, %c0_5] : memref<8x64xf32, #tpu.memory_space<vmem>>, vector<8x64xf32>
    %cst_6 = arith.constant dense<0.000000e+00> : vector<8x128xf32>
    %6 = tpu.matmul %5, %4, %cst_6 {dimension_numbers = #tpu.dot_dimension_numbers<[1], [0], [0], [1], [0, 0, 1, 1], [], []>} : vector<8x64xf32>, vector<64x128xf32>, vector<8x128xf32> -> vector<8x128xf32>
    %c0_7 = arith.constant 0 : index
    %c0_8 = arith.constant 0 : index
    %7 = vector.load %arg4[%c0_7, %c0_8] : memref<8x128xf32, #tpu.memory_space<vmem>>, vector<8x128xf32>
    tpu.vector_store %arg4[%c0_7, %c0_8], %6 {strides = array<i32>} : memref<8x128xf32, #tpu.memory_space<vmem>>, vector<8x128xf32>,
    return
  }
  func.func @transform_0(%arg0: i32) -> (i32, i32) {
    %c0_i32 = arith.constant 0 : i32
    %c0_i32_0 = arith.constant 0 : i32
    return %c0_i32, %arg0 : i32, i32
  }
  func.func @transform_1(%arg0: i32) -> (i32, i32) {
    %c0_i32 = arith.constant 0 : i32
    %c0_i32_0 = arith.constant 0 : i32
    %c0_i32_1 = arith.constant 0 : i32
    return %c0_i32, %c0_i32_0 : i32, i32
  }
  func.func @transform_2(%arg0: i32) -> (i32, i32) {
    %c0_i32 = arith.constant 0 : i32
    %c0_i32_0 = arith.constant 0 : i32
    %c0_i32_1 = arith.constant 0 : i32
    return %c0_i32, %c0_i32_0 : i32, i32
  }
  func.func @transform_3(%arg0: i32) -> (i32, i32) {
    %c0_i32 = arith.constant 0 : i32
    %c0_i32_0 = arith.constant 0 : i32
    return %c0_i32, %arg0 : i32, i32
  }
}

</mosaic_0001>

<bundles_post_ra>
// kernel: mlp_forward.1
= control target key start
LH: loop header
LB: loop body
LE: loop exit
PB: predicated region body
PF: predicated region fallthrough
CT: control target
= control target key end

     0   :  { %vm25_vm0 = vcmask 130048   ;;  %s437_s0 = inlined_call_operand.vmem [shape: f32[16,128], index: 0, kind: input, shape index: {}]   ;;  %s438_s1 = inlined_call_operand.vmem [shape: f32[64,16], index: 1, kind: input, shape index: {}]   ;;  %s439_s2 = inlined_call_operand.vmem [shape: f32[8,64], index: 2, kind: input, shape index: {}]   ;;  %s440_s3 = inlined_call_operand.hbm [shape: f32[8,128], index: 3, kind: output, shape index: {}]  }
   0x1   :  { %v23_v0 = vld [vmem:[%s437_s0] sm:$0xff]  ;;  %v24_v1 = vld [vmem:[%s437_s0 + $0x8] sm:$0xff] }
   0x2   :  { %v15_v2 = vld [vmem:[%s438_s1] sm:$0xff]  ;;  %v316_v3 = vpack.c.bf16 %v24_v1, %v23_v0 }
   0x3   :  { %285 = vmatprep.mubr.msk.f32.mxu0 %vm25_vm0, %v15_v2 }
   0x4   :  { %317 = vmatprep.subr.bf16.mxu0 %v316_v3 }
   0x5   :  { %8 = vsyncpa [#allocation3], 0  ;;  %319 = vmatpush3.bf16.msra.mxu0 %v316_v3  ;;  %v16_v4 = vld [vmem:[%s438_s1 + $0x8] sm:$0xff]  ;;  %v17_v5 = vld [vmem:[%s438_s1 + $0x10] sm:$0xff]  ;;  %v360_v11 = vmov 0.0|0.0   ;;  %vm361_vm1 = vmmov 0  }
   0x6   :  { %v18_v6 = vld [vmem:[%s438_s1 + $0x18] sm:$0xff]  ;;  %v19_v7 = vld [vmem:[%s438_s1 + $0x20] sm:$0xff]  ;;  %v20_v8 = vld [vmem:[%s438_s1 + $0x28] sm:$0xff]  ;;  %320 = vmatprep.subr.bf16.mxu1 %v360_v11  ;;  %v362_v12 = vmov 0.0   ;;  %vm164_vm2 = vcmask 523264   ;;  %s363_s5 = smov [#allocation2]  }
   0x7   :  { %v21_v9 = vld [vmem:[%s438_s1 + $0x30] sm:$0xff]  ;;  %v22_v10 = vld [vmem:[%s438_s1 + $0x38] sm:$0xff]  ;;  %313 = vmatprep.mubr.msk.f32.mxu1 %vm361_vm1, %v362_v12  ;;  %v163_v33 = vld [vmem:[%s439_s2] sm:$0xff]  ;;  %s245_s6 = sshll.u32 %s363_s5, 4  ;;  %s246_s6 = int_to_ptr.vmem [resolvable:$true] %s245_s6 }
   0x8   :  { %286 = vmatmul.mubr.msk.f32.vlgmr.msra.gmra.mrb[0].mxu0 %vm25_vm0, %v16_v4  ;;  %s336_s7 = scalar_lea.vmem %s246_s6, 128  ;;  %p341_p1 = scmp.lt.s32.totalorder %s246_s6, %s246_s6 }
   0x9   :  { %288 = vmatprep.mubr.msk.f32.mxu0 %vm25_vm0, %v17_v5  ;;  %p337_p0 = scmp.ne.s32.totalorder %s246_s6, %s336_s7  ;;  %p342_p2 = scmp.lt.s32.totalorder %s336_s7, %s336_s7 }
   0xb   :  { %p343_p3 = por %p342_p2, %p341_p1 }
   0xc   :  { %289 = vmatmul.mubr.msk.f32.gmra.mrb[2].mxu0 %vm25_vm0, %v18_v6 }
   0xd   :  { %291 = vmatprep.mubr.msk.f32.mxu0 %vm25_vm0, %v19_v7  ;;  %p344_p4 = pnand %p343_p3, %p337_p0 }
  0x10   :  { %292 = vmatmul.mubr.msk.f32.gmra.mrb[4].mxu0 %vm25_vm0, %v20_v8 }
  0x11   :  { %294 = vmatprep.mubr.msk.f32.mxu0 %vm25_vm0, %v21_v9 }
  0x14   :  { %295 = vmatmul.mubr.msk.f32.gmra.mrb[6].mxu0 %vm25_vm0, %v22_v10 }
  0xdb   :  { %v287_v13 = vpop.f32.mrb[0].mxu0 }
  0xdc   :  { %v156_v14 = vmax.f32 %v287_v13, 0.0  ;;  %v116_v15 = vpop.f32.mrb[1].mxu0 }
  0xdd   :  { %v155_v16 = vmax.f32 %v116_v15, 0.0 }
  0xdf   :  { %v290_v17 = vpop.f32.mrb[2].mxu0  ;;  %v321_v18 = vpack.c.bf16 %v156_v14, %v155_v16 }
  0xe0   :  { %v158_v19 = vmax.f32 %v290_v17, 0.0  ;;  %v126_v20 = vpop.f32.mrb[3].mxu0 }
  0xe1   :  { %v157_v21 = vmax.f32 %v126_v20, 0.0  ;;  %322 = vmatpush3.bf16.msra.mxu1 %v321_v18 }
  0xe2   :  { %323 = vmatprep.subr.bf16.mxu1 %v360_v11 }
  0xe3   :  { %v324_v22 = vpack.c.bf16 %v158_v19, %v157_v21  ;;  %v293_v23 = vpop.f32.mrb[4].mxu0 }
  0xe4   :  { %v160_v24 = vmax.f32 %v293_v23, 0.0  ;;  %v136_v25 = vpop.f32.mrb[5].mxu0 }
  0xe5   :  { %v159_v26 = vmax.f32 %v136_v25, 0.0  ;;  %325 = vmatpush3.bf16.msra.mxu1 %v324_v22 }
  0xe6   :  { %326 = vmatprep.subr.bf16.mxu1 %v360_v11 }
  0xe7   :  { %v327_v27 = vpack.c.bf16 %v160_v24, %v159_v26  ;;  %v296_v28 = vpop.f32.mrb[6].mxu0 }
  0xe8   :  { %v162_v29 = vmax.f32 %v296_v28, 0.0  ;;  %v146_v30 = vpop.f32.mrb[7].mxu0 }
  0xe9   :  { %v161_v31 = vmax.f32 %v146_v30, 0.0  ;;  %328 = vmatpush3.bf16.msra.mxu1 %v327_v27 }
  0xea   :  { %329 = vmatprep.subr.bf16.mxu1 %v360_v11 }
  0xeb   :  { %v330_v32 = vpack.c.bf16 %v162_v29, %v161_v31 }
  0xed   :  { %331 = vmatpush3.bf16.msra.mxu1 %v330_v32 }
  0xf0   :  { %314 = vmatmul.mubr.msk.f32.vlgmr.msra.gmra.mrb[0].mxu1 %vm164_vm2, %v163_v33 }
 0x1c3   :  { %v234_v34 = vpop.f32.mrb[0].mxu1 }
 0x1c4   :  { %238 = vst [vmem:[#allocation2] sm:$0xff] %v234_v34  ;;  %v315_v35 = vpop.f32.mrb[1].mxu1 }
 0x1c5   :  { %347 = shalt.err (!%p344_p4)
}
 0x1c6   :  { %s348_s10 = scalar_lea.hbm %s440_s3, 128 }
 0x1c7   :  { %p349_p5 = scmp.ne.s32.totalorder %s440_s3, %s348_s10  ;;  %p352_p6 = scmp.lt.u32.totalorder %s348_s10, %s440_s3 }
 0x1c9   :  { %p354_p7 = pnand %p352_p6, %p349_p5 }
 0x1cb   :  { %357 = shalt.err (!%p354_p7)
}
 0x1cc   :  { %248 = dma.vmem_to_hbm [thread:$0]  %s246_s6, 128, %s440_s3, [#allocation3]  }
 0x1cd   :  { %358 = dma.done.wait [#allocation3], 128  }
 0x1ce   :  { %359 = vsyncadd [#allocation3], 4294967168 }
 0x1cf   :  { %252 = vsyncpa [#allocation3], 1 }

</bundles_post_ra>
